<compile_context>
chip_gen: v7x
topology: tpu7x:2x2x1
jax: 0.10.0
libtpu: 0.0.40
codegen_flags: <defaults>
</compile_context>

<pallas_src>
import jax
import jax.numpy as jnp
from jax.experimental import pallas as pl
from jax.experimental.pallas import tpu as pltpu


def _round_up(n, m):
    return ((n + m - 1) // m) * m


def _cdiv(a, b):
    return (a + b - 1) // b


def sentiment_lstm_kernel(x_ref, wih_ref, bias_ref, wfc_ref, bfc_ref, out_ref):
    # x_ref:    (TB, D)        input tile
    # wih_ref:  (D, 3*Hp)      packed gate columns [i | g | o], padded lanes 0
    # bias_ref: (1, 3*Hp)      b_ih + b_hh in the same packed layout
    # wfc_ref:  (8, Hp)        FC weights in row 0, rows 1..7 zero (8-aligned M)
    # bfc_ref:  (1, 1) SMEM    FC bias scalar
    # out_ref:  (1, 1, TB)     sigmoid(logit), lane-dense along the batch tile
    hp = wfc_ref.shape[-1]

    gates = jnp.dot(x_ref[...], wih_ref[...],
                    preferred_element_type=jnp.float32)
    gates = gates + bias_ref[...]                       # VPU broadcast-add

    i_gate = jax.nn.sigmoid(gates[:, 0 * hp:1 * hp])
    g_gate = jnp.tanh(gates[:, 1 * hp:2 * hp])
    o_gate = jax.nn.sigmoid(gates[:, 2 * hp:3 * hp])

    c = i_gate * g_gate                                 # padded lanes stay 0
    h = o_gate * jnp.tanh(c)                            # (TB, Hp)

    # TODO(synk): dropout(p=0.3) is stochastic in train mode; eval identity here.

    # FC head in NT form (contract the Hp axis of both operands) so the logits
    # land lane-dense: (8, Hp) x (TB, Hp)^T -> (8, TB); only row 0 is real.
    logits8 = jax.lax.dot_general(
        wfc_ref[...], h,
        dimension_numbers=(((1,), (1,)), ((), ())),
        preferred_element_type=jnp.float32)
    out = jax.nn.sigmoid(logits8[0:1, :] + bfc_ref[0, 0])   # (1, TB)
    out_ref[...] = out.reshape(out_ref.shape).astype(out_ref.dtype)


def prepare_sentiment_lstm_params(w_ih, w_hh, b_ih, b_hh, w_fc, b_fc):
    """One-time repack of PyTorch-layout LSTM/FC weights.  Call once, reuse."""
    four_h, d = w_ih.shape
    hidden = four_h // 4
    hp = _round_up(hidden, 128)                  # per-gate lane width
    del w_hh  # seq_len == 1 and h0 == 0 -> recurrent matmul contributes nothing

    wih_t = w_ih.T.astype(jnp.float32)           # (D, 4H), column blocks [i|f|g|o]
    bias = (b_ih + b_hh).astype(jnp.float32)     # (4H,)

    wih_packed = jnp.zeros((d, 3 * hp), jnp.float32)
    bias_row = jnp.zeros((1, 3 * hp), jnp.float32)
    # Packed gate order [i | g | o]; the dead f gate is dropped (c0 == 0).
    for dst, src in enumerate((0, 2, 3)):
        wih_packed = wih_packed.at[:, dst * hp:dst * hp + hidden].set(
            wih_t[:, src * hidden:(src + 1) * hidden])
        bias_row = bias_row.at[0, dst * hp:dst * hp + hidden].set(
            bias[src * hidden:(src + 1) * hidden])

    wfc_pad = jnp.zeros((8, hp), jnp.float32).at[0, :hidden].set(
        w_fc.reshape(-1).astype(jnp.float32))
    bfc = jnp.asarray(b_fc, jnp.float32).reshape(1, 1)

    return dict(wih=wih_packed, bias=bias_row, wfc=wfc_pad, bfc=bfc,
                input_size=d, hidden=hidden, hp=hp)


def sentiment_lstm_forward(x, params, *, batch_tile=2048):
    """x: (B, input_size) float32; params from prepare_sentiment_lstm_params.
    Returns (B, 1) float32 (eval-mode forward)."""
    batch, d = x.shape
    assert d == params["input_size"], (d, params["input_size"])
    hp = params["hp"]
    x = x.astype(jnp.float32)

    # ---- batch tiling -------------------------------------------------------
    b8 = _round_up(max(batch, 1), 8)
    if b8 <= batch_tile:
        tb = b8                                   # single tile, minimal padding
    else:
        n = _cdiv(b8, batch_tile)
        if n % 2:
            n += 1                                # even tile count: v7x 2-TC balance
        tb = _round_up(_cdiv(b8, n), 128)         # 128-multiple: unmasked stores
    b_pad = _round_up(b8, tb)
    num_tiles = b_pad // tb

    if b_pad != batch:                            # single wrapper pass, only if needed
        x = jnp.pad(x, ((0, b_pad - batch), (0, 0)))

    out = pl.pallas_call(
        sentiment_lstm_kernel,
        out_shape=jax.ShapeDtypeStruct((num_tiles, 1, tb), jnp.float32),
        grid=(num_tiles,),
        in_specs=[
            pl.BlockSpec((tb, d), lambda i: (i, 0)),              # x tile
            pl.BlockSpec((d, 3 * hp), lambda i: (0, 0)),          # resident weights
            pl.BlockSpec((1, 3 * hp), lambda i: (0, 0)),          # resident bias row
            pl.BlockSpec((8, hp), lambda i: (0, 0)),              # resident fc rows
            pl.BlockSpec(memory_space=pltpu.MemorySpace.SMEM),    # fc bias scalar
        ],
        out_specs=pl.BlockSpec((1, 1, tb), lambda i: (i, 0, 0)),
        compiler_params=pltpu.CompilerParams(
            dimension_semantics=("parallel",)),   # shard batch tiles across TCs
    )(x, params["wih"], params["bias"], params["wfc"], params["bfc"])

    return out.reshape(b_pad, 1)[:batch]


def reference_forward(x, w_ih, w_hh, b_ih, b_hh, w_fc, b_fc):
    del w_hh
    gates = x @ w_ih.T + b_ih + b_hh
    hidden = w_ih.shape[0] // 4
    i = jax.nn.sigmoid(gates[:, 0 * hidden:1 * hidden])
    g = jnp.tanh(gates[:, 2 * hidden:3 * hidden])
    o = jax.nn.sigmoid(gates[:, 3 * hidden:4 * hidden])
    c = i * g
    h = o * jnp.tanh(c)
    return jax.nn.sigmoid(h @ w_fc.T + b_fc)


if __name__ == "__main__":
    input_size = 16
    hidden_size = 32

    key = jax.random.PRNGKey(0)
    keys = jax.random.split(key, 8)
    scale = 0.1

    # nn.LSTM single-layer parameter shapes + nn.Linear(hidden, 1).
    w_ih = scale * jax.random.normal(keys[1], (4 * hidden_size, input_size), dtype=jnp.float32)
    w_hh = scale * jax.random.normal(keys[2], (4 * hidden_size, hidden_size), dtype=jnp.float32)
    b_ih = scale * jax.random.normal(keys[3], (4 * hidden_size,), dtype=jnp.float32)
    b_hh = scale * jax.random.normal(keys[4], (4 * hidden_size,), dtype=jnp.float32)
    w_fc = scale * jax.random.normal(keys[5], (1, hidden_size), dtype=jnp.float32)
    b_fc = scale * jax.random.normal(keys[6], (1,), dtype=jnp.float32)

    params = prepare_sentiment_lstm_params(w_ih, w_hh, b_ih, b_hh, w_fc, b_fc)

    # 1) Toy batch (matches the module's typical usage).
    batch = 2
    x = jax.random.normal(keys[0], (batch, input_size), dtype=jnp.float32)
    out = jax.block_until_ready(sentiment_lstm_forward(x, params))
    ref = reference_forward(x, w_ih, w_hh, b_ih, b_hh, w_fc, b_fc)
    assert out.shape == (batch, 1), out.shape
    assert jnp.allclose(out, ref, atol=2e-5, rtol=2e-5), (out, ref)

    # 2) Non-multiple-of-8 batch: exercises the single-tile padded path.
    batch2 = 300
    x2 = jax.random.normal(keys[7], (batch2, input_size), dtype=jnp.float32)
    ref2 = reference_forward(x2, w_ih, w_hh, b_ih, b_hh, w_fc, b_fc)
    out2 = jax.block_until_ready(sentiment_lstm_forward(x2, params))
    assert out2.shape == (batch2, 1), out2.shape
    assert jnp.allclose(out2, ref2, atol=2e-5, rtol=2e-5), (out2, ref2)

    # 3) Small batch_tile forces a multi-tile grid (exercises grid > 1 path).
    out3 = jax.block_until_ready(
        sentiment_lstm_forward(x2, params, batch_tile=128))
    assert out3.shape == (batch2, 1), out3.shape
    assert jnp.allclose(out3, ref2, atol=2e-5, rtol=2e-5), (out3, ref2)

    print("KERNEL_OK")
</pallas_src>

<mosaic_0001>
module attributes {stable_mosaic.version = 11 : i64} {
  func.func @sentiment_lstm_kernel(%arg0: i32, %arg1: memref<8x16xf32, #tpu.memory_space<vmem>>, %arg2: memref<16x384xf32, #tpu.memory_space<vmem>>, %arg3: memref<1x384xf32, #tpu.memory_space<vmem>>, %arg4: memref<8x128xf32, #tpu.memory_space<vmem>>, %arg5: memref<1x1xf32, #tpu.memory_space<smem>>, %arg6: memref<1x1x8xf32, #tpu.memory_space<vmem>>) attributes {dimension_semantics = [#tpu.dimension_semantics<parallel>], iteration_bounds = array<i64: 1>, scalar_prefetch = 0 : i64, scratch_operands = 0 : i64, tpu.core_type = #tpu.core_type<tc>, window_params = [{transform_indices = @transform_0, window_bounds = array<i64: 8, 16>}, {pipeline_mode = #tpu.pipeline_mode<synchronous>, transform_indices = @transform_1, window_bounds = array<i64: 16, 384>}, {pipeline_mode = #tpu.pipeline_mode<synchronous>, transform_indices = @transform_2, window_bounds = array<i64: 1, 384>}, {pipeline_mode = #tpu.pipeline_mode<synchronous>, transform_indices = @transform_3, window_bounds = array<i64: 8, 128>}, {transform_indices = @transform_4, window_bounds = array<i64: 1, 1>}, {transform_indices = @transform_5, window_bounds = array<i64: 1, 1, 8>}]} {
    %c0 = arith.constant 0 : index
    %c0_0 = arith.constant 0 : index
    %0 = vector.load %arg1[%c0, %c0_0] : memref<8x16xf32, #tpu.memory_space<vmem>>, vector<8x16xf32>
    %c0_1 = arith.constant 0 : index
    %c0_2 = arith.constant 0 : index
    %1 = vector.load %arg2[%c0_1, %c0_2] : memref<16x384xf32, #tpu.memory_space<vmem>>, vector<16x384xf32>
    %cst = arith.constant dense<0.000000e+00> : vector<8x384xf32>
    %2 = tpu.matmul %0, %1, %cst {dimension_numbers = #tpu.dot_dimension_numbers<[1], [0], [0], [1], [0, 0, 1, 1], [], []>} : vector<8x16xf32>, vector<16x384xf32>, vector<8x384xf32> -> vector<8x384xf32>
    %c0_3 = arith.constant 0 : index
    %c0_4 = arith.constant 0 : index
    %3 = vector.load %arg3[%c0_3, %c0_4] : memref<1x384xf32, #tpu.memory_space<vmem>>, vector<1x384xf32>
    %4 = vector.broadcast %3 : vector<1x384xf32> to vector<8x384xf32>
    %5 = arith.addf %2, %4 : vector<8x384xf32>
    %6 = vector.extract_strided_slice %5 {offsets = [0, 0], sizes = [8, 128], strides = [1, 1]} : vector<8x384xf32> to vector<8x128xf32>
    %7 = arith.negf %6 : vector<8x128xf32>
    %8 = math.exp %7 : vector<8x128xf32>
    %cst_5 = arith.constant 1.000000e+00 : f32
    %9 = vector.broadcast %cst_5 : f32 to vector<8x128xf32>
    %10 = arith.addf %9, %8 : vector<8x128xf32>
    %11 = arith.divf %9, %10 : vector<8x128xf32>
    %12 = vector.extract_strided_slice %5 {offsets = [0, 128], sizes = [8, 128], strides = [1, 1]} : vector<8x384xf32> to vector<8x128xf32>
    %13 = math.tanh %12 : vector<8x128xf32>
    %14 = vector.extract_strided_slice %5 {offsets = [0, 256], sizes = [8, 128], strides = [1, 1]} : vector<8x384xf32> to vector<8x128xf32>
    %15 = arith.negf %14 : vector<8x128xf32>
    %16 = math.exp %15 : vector<8x128xf32>
    %cst_6 = arith.constant 1.000000e+00 : f32
    %17 = vector.broadcast %cst_6 : f32 to vector<8x128xf32>
    %18 = arith.addf %17, %16 : vector<8x128xf32>
    %19 = arith.divf %17, %18 : vector<8x128xf32>
    %20 = arith.mulf %11, %13 : vector<8x128xf32>
    %21 = math.tanh %20 : vector<8x128xf32>
    %22 = arith.mulf %19, %21 : vector<8x128xf32>
    %c0_7 = arith.constant 0 : index
    %c0_8 = arith.constant 0 : index
    %23 = vector.load %arg4[%c0_7, %c0_8] : memref<8x128xf32, #tpu.memory_space<vmem>>, vector<8x128xf32>
    %cst_9 = arith.constant dense<0.000000e+00> : vector<8x8xf32>
    %24 = tpu.matmul %23, %22, %cst_9 {dimension_numbers = #tpu.dot_dimension_numbers<[1], [1], [0], [0], [0, 0, 1, 0], [], []>} : vector<8x128xf32>, vector<8x128xf32>, vector<8x8xf32> -> vector<8x8xf32>
    %25 = vector.extract_strided_slice %24 {offsets = [0, 0], sizes = [1, 8], strides = [1, 1]} : vector<8x8xf32> to vector<1x8xf32>
    %c0_10 = arith.constant 0 : index
    %c0_11 = arith.constant 0 : index
    %26 = memref.load %arg5[%c0_10, %c0_11] : memref<1x1xf32, #tpu.memory_space<smem>>
    %27 = vector.broadcast %26 : f32 to vector<1x8xf32>
    %28 = arith.addf %25, %27 : vector<1x8xf32>
    %29 = arith.negf %28 : vector<1x8xf32>
    %30 = math.exp %29 : vector<1x8xf32>
    %cst_12 = arith.constant 1.000000e+00 : f32
    %31 = vector.broadcast %cst_12 : f32 to vector<1x8xf32>
    %32 = arith.addf %31, %30 : vector<1x8xf32>
    %33 = arith.divf %31, %32 : vector<1x8xf32>
    %34 = vector.shape_cast %33 : vector<1x8xf32> to vector<1x1x8xf32>
    %c0_13 = arith.constant 0 : index
    %c0_14 = arith.constant 0 : index
    %c0_15 = arith.constant 0 : index
    %35 = vector.load %arg6[%c0_13, %c0_14, %c0_15] : memref<1x1x8xf32, #tpu.memory_space<vmem>>, vector<1x1x8xf32>
    tpu.vector_store %arg6[%c0_13, %c0_14, %c0_15], %34 {strides = array<i32>} : memref<1x1x8xf32, #tpu.memory_space<vmem>>, vector<1x1x8xf32>,
    return
  }
  func.func @transform_0(%arg0: i32) -> (i32, i32) {
    %c0_i32 = arith.constant 0 : i32
    %c0_i32_0 = arith.constant 0 : i32
    return %arg0, %c0_i32 : i32, i32
  }
  func.func @transform_1(%arg0: i32) -> (i32, i32) {
    %c0_i32 = arith.constant 0 : i32
    %c0_i32_0 = arith.constant 0 : i32
    %c0_i32_1 = arith.constant 0 : i32
    return %c0_i32, %c0_i32_0 : i32, i32
  }
  func.func @transform_2(%arg0: i32) -> (i32, i32) {
    %c0_i32 = arith.constant 0 : i32
    %c0_i32_0 = arith.constant 0 : i32
    %c0_i32_1 = arith.constant 0 : i32
    return %c0_i32, %c0_i32_0 : i32, i32
  }
  func.func @transform_3(%arg0: i32) -> (i32, i32) {
    %c0_i32 = arith.constant 0 : i32
    %c0_i32_0 = arith.constant 0 : i32
    %c0_i32_1 = arith.constant 0 : i32
    return %c0_i32, %c0_i32_0 : i32, i32
  }
  func.func @transform_4(%arg0: i32) -> (i32, i32) {
    %c0_i32 = arith.constant 0 : i32
    %c0_i32_0 = arith.constant 0 : i32
    %c0_i32_1 = arith.constant 0 : i32
    return %c0_i32, %c0_i32_0 : i32, i32
  }
  func.func @transform_5(%arg0: i32) -> (i32, i32, i32) {
    %c0_i32 = arith.constant 0 : i32
    %c0_i32_0 = arith.constant 0 : i32
    %c0_i32_1 = arith.constant 0 : i32
    return %arg0, %c0_i32, %c0_i32_0 : i32, i32, i32
  }
}

</mosaic_0001>

<bundles_post_ra>
// kernel: tpu_custom_call.1
= control target key start
LH: loop header
LB: loop body
LE: loop exit
PB: predicated region body
PF: predicated region fallthrough
CT: control target
= control target key end

     0   :  { %11 = vsyncpa [#allocation4], 0  ;;  %s548_s0 = inlined_call_operand.hbm [shape: f32[8,16], index: 0, kind: input, shape index: {}]   ;;  %s549_s1 = inlined_call_operand.hbm [shape: f32[16,384], index: 1, kind: input, shape index: {}]   ;;  %s550_s2 = inlined_call_operand.vmem [shape: f32[1,384], index: 2, kind: input, shape index: {}]   ;;  %s551_s3 = inlined_call_operand.vmem [shape: f32[8,128], index: 3, kind: input, shape index: {}]   ;;  %s552_s4 = inlined_call_operand.<no memory space> [shape: f32[1,1], index: 4, kind: input, shape index: {}]   ;;  %s553_s5 = inlined_call_operand.hbm [shape: f32[1,1,8], index: 5, kind: output, shape index: {}]  }
   0x1   :  { %12 = vsyncpa [#allocation7], 0 }
   0x2   :  { %13 = vsyncpa [#allocation5], 0  ;;  %s456_s18 = smov [#allocation3]   ;;  %s457_s20 = smov [#allocation6]  }
   0x3   :  { %s20_s19 = sshll.u32 %s456_s18, 4  ;;  %s29_s21 = sshll.u32 %s457_s20, 4  ;;  %s21_s19 = int_to_ptr.vmem [resolvable:$true] %s20_s19  ;;  %s494_s21 = int_to_ptr.vmem [resolvable:$true] %s29_s21 }
   0x4   :  { %s384_s24 = scalar_lea.hbm %s548_s0, 128 }
   0x5   :  { %p385_p0 = scmp.ne.s32.totalorder %s548_s0, %s384_s24  ;;  %p388_p1 = scmp.lt.u32.totalorder %s384_s24, %s548_s0 }
   0x7   :  { %p390_p2 = pnand %p388_p1, %p385_p0 }
   0x9   :  { %393 = shalt.err (!%p390_p2)
}
   0xa   :  { %s394_s29 = scalar_lea.vmem %s21_s19, 128  ;;  %p399_p4 = scmp.lt.s32.totalorder %s21_s19, %s21_s19 }
   0xb   :  { %p395_p3 = scmp.ne.s32.totalorder %s21_s19, %s394_s29  ;;  %p400_p5 = scmp.lt.s32.totalorder %s394_s29, %s394_s29 }
   0xd   :  { %p401_p6 = por %p400_p5, %p399_p4 }
   0xf   :  { %p402_p7 = pnand %p401_p6, %p395_p3 }
  0x11   :  { %405 = shalt.err (!%p402_p7)
}
  0x12   :  { %23 = dma.hbm_to_vmem [thread:$0]  %s548_s0, 128, %s21_s19, [#allocation4]  }
  0x13   :  { %s406_s9 = scalar_lea.hbm %s549_s1, 768 }
  0x14   :  { %p407_p8 = scmp.ne.s32.totalorder %s549_s1, %s406_s9  ;;  %p410_p9 = scmp.lt.u32.totalorder %s406_s9, %s549_s1 }
  0x16   :  { %p412_p10 = pnand %p410_p9, %p407_p8 }
  0x18   :  { %415 = shalt.err (!%p412_p10)
}
  0x19   :  { %s416_s14 = scalar_lea.vmem %s494_s21, 768  ;;  %p421_p12 = scmp.lt.s32.totalorder %s494_s21, %s494_s21 }
  0x1a   :  { %p417_p11 = scmp.ne.s32.totalorder %s494_s21, %s416_s14  ;;  %p422_p13 = scmp.lt.s32.totalorder %s416_s14, %s416_s14 }
  0x1c   :  { %p423_p0 = por %p422_p13, %p421_p12 }
  0x1e   :  { %p424_p1 = pnand %p423_p0, %p417_p11 }
  0x20   :  { %427 = shalt.err (!%p424_p1)
}
  0x21   :  { %s458_s0 = smov 384   ;;  %s459_s15 = smov 24  }
  0x22   :  { %35 = dma.hbm_to_vmem [thread:$0]  %s549_s1, 768, %s494_s21, [#allocation7], %s458_s0, %s458_s0, %s459_s15  }
  0x23   :  { %450 = dma.done.wait [#allocation4], 128  }
  0x24   :  { %451 = vsyncadd [#allocation4], 4294967168 }
  0x25   :  { %452 = dma.done.wait [#allocation7], 768  }
  0x26   :  { %453 = vsyncadd [#allocation7], 4294966528  ;;  %v460_v0 = vmov 0.0   ;;  %v461_v1 = vmov 0.0|0.0   ;;  %vm462_vm0 = vmmov 0   ;;  %v50_v2 = vld [vmem:[#allocation6 + $0x8] sm:$0xff]  ;;  %v57_v12 = vlaneseq }
  0x27   :  { %140 = vmatprep.mubr.f32.mxu0 %v460_v0  ;;  %357 = vmatprep.subr.bf16.mxu1 %v461_v1  ;;  %v53_v3 = vld [vmem:[#allocation6 + $0x20] sm:$0xff]  ;;  %v52_v6 = vld [vmem:[#allocation6 + $0x18] sm:$0xff]  ;;  %v51_v7 = vld [vmem:[#allocation6 + $0x10] sm:$0xff]  ;;  %vm72_vm1 = vcmask 130048   ;;  %v305_v41 = vstv %s552_s4  ;;  %s463_s22 = smov [#allocation8]   ;;  %vm313_vm2 = vcmask 57344  }
  0x28   :  { %345 = vmatprep.mubr.msk.f32.mxu1 %vm462_vm0, %v460_v0  ;;  %v49_v4 = vld [vmem:[#allocation6] sm:$0xff]  ;;  %v353_v5 = vpack.c.bf16 %v53_v3, %v50_v2  ;;  %v54_v9 = vld [vmem:[#allocation6 + $0x28] sm:$0xff]  ;;  %v48_v11 = vld [vmem:[#allocation3] sm:$0xff]  ;;  %v58_v13 = vshrl.u32 %v57_v12, 7  ;;  %s321_s23 = sshll.u32 %s463_s22, 4  ;;  %s322_s23 = int_to_ptr.vmem [resolvable:$true] %s321_s23 }
  0x29   :  { %v355_v8 = vpack.c.bf16 %v52_v6, %v49_v4  ;;  %v358_v10 = vpack.c.bf16 %v54_v9, %v51_v7  ;;  %v55_v15 = vld [vmem:[%s550_s2] sm:$0x7]  ;;  %s432_s24 = scalar_lea.vmem %s322_s23, 32  ;;  %p433_p3 = scmp.lt.s32.totalorder %s322_s23, %s322_s23 }
  0x2a   :  { %354 = vmatprep.subr.bf16.mxu0 %v353_v5  ;;  %v59_v14 = vsub.s32 0, %v58_v13  ;;  %v67_v16 = vsub.s32 2, %v58_v13  ;;  %v63_v26 = vsub.s32 1, %v58_v13  ;;  %v233_v40 = vld [vmem:[%s551_s3] sm:$0xff]  ;;  %s428_s3 = scalar_lea.vmem %s322_s23, 16 }
  0x2b   :  { %356 = vmatpush1.bf16.msra.mxu0 %v355_v8  ;;  %359 = vmatpush3.bf16.msra.mxu1 %v358_v10  ;;  %p429_p2 = scmp.ne.s32.totalorder %s322_s23, %s428_s3  ;;  %p434_p4 = scmp.lt.s32.totalorder %s432_s24, %s428_s3 }
  0x2c   :  { %348 = vmatprep.subr.mxu0 %v460_v0  ;;  %v60_v17 = vrot.slane %v55_v15, %v59_v14  ;;  %v68_v19 = vrot.slane %v55_v15, %v67_v16  ;;  %v64_v28 = vrot.slane %v55_v15, %v63_v26 }
  0x2d   :  { %p435_p5 = por %p434_p4, %p433_p3 }
  0x2e   :  { %331 = vmatmul.mubr.msk.f32.vlgmr.msra.gmra.mrb[0].mxu0 %vm72_vm1, %v48_v11  ;;  %346 = vmatmul.mubr.msk.f32.vlgmr.msra.gmra.mrb[0].mxu1 %vm72_vm1, %v48_v11 }
  0x2f   :  { %350 = vmatprep.mubr.msk.f32.mxu0 %vm462_vm0, %v460_v0  ;;  %p436_p6 = pnand %p435_p5, %p429_p2 }
 0x101   :  { %v142_v18 = vpop.f32.mrb[0].mxu0  ;;  %v213_v22 = vpop.f32.mrb[0].mxu1 }
 0x102   :  { %v143_v20 = vadd.f32 %v142_v18, %v60_v17  ;;  %v144_v21 = vpop.f32.mrb[1].mxu0  ;;  %v347_v23 = vpop.f32.mrb[1].mxu1  ;;  %v214_v25 = vadd.f32 %v213_v22, %v68_v19 }
 0x103   :  { %v145_v29 = vadd.f32 %v144_v21, %v64_v28 }
 0x104   :  { %v333_v24 = vmul.f32 -1.442695, %v143_v20  ;;  %v334_v27 = vmul.f32 -1.442695, %v214_v25 }
 0x106   :  { %368 = vpow2.f32 %v333_v24 }
 0x107   :  { %370 = vpow2.f32 %v334_v27 }
 0x108   :  { %372 = vtanh.f32 %v145_v29 }
 0x110   :  { %v369_v30 = vpop.eup %368 }
 0x111   :  { %v220_v31 = vadd.f32 1.0, %v369_v30  ;;  %v371_v32 = vpop.eup %370 }
 0x112   :  { %v227_v33 = vadd.f32 1.0, %v371_v32  ;;  %v373_v34 = vpop.eup %372 }
 0x113   :  { %374 = vrcp.f32 %v220_v31 }
 0x114   :  { %376 = vrcp.f32 %v227_v33 }
 0x11d   :  { %v375_v35 = vpop.eup %374 }
 0x11e   :  { %v230_v36 = vmul.f32 %v375_v35, %v373_v34  ;;  %v377_v37 = vpop.eup %376 }
 0x120   :  { %378 = vtanh.f32 %v230_v36 }
 0x12a   :  { %v379_v38 = vpop.eup %378 }
 0x12b   :  { %v232_v39 = vmul.f32 %v379_v38, %v377_v37 }
 0x12d   :  { %349 = vmatpush3.xpose.msra.mxu0 %v232_v39 }
 0x130   :  { %351 = vmatmul.mubr.f32.vlgmr.msra.gmra.mrb[2].mxu0 %v233_v40 }
 0x203   :  { %v300_v42 = vpop.f32.mrb[2].mxu0 }
 0x204   :  { %v306_v43 = vadd.f32 %v305_v41, %v300_v42  ;;  %v352_v44 = vpop.f32.mrb[3].mxu0 }
 0x206   :  { %v335_v45 = vmul.f32 -1.442695, %v306_v43 }
 0x208   :  { %380 = vpow2.f32 %v335_v45 }
 0x212   :  { %v381_v46 = vpop.eup %380 }
 0x213   :  { %v310_v47 = vadd.f32 1.0, %v381_v46 }
 0x215   :  { %382 = vrcp.f32 %v310_v47 }
 0x21f   :  { %v383_v48 = vpop.eup %382 }
 0x220   :  { %314 = vst.msk [vmem:[#allocation8] sm:$0x1] %vm313_vm2, %v383_v48 }
 0x221   :  { %439 = shalt.err (!%p436_p6)
}
 0x222   :  { %s440_s26 = scalar_lea.hbm %s553_s5, 16 }
 0x223   :  { %p441_p7 = scmp.ne.s32.totalorder %s553_s5, %s440_s26  ;;  %p444_p8 = scmp.lt.u32.totalorder %s440_s26, %s553_s5 }
 0x225   :  { %p446_p9 = pnand %p444_p8, %p441_p7 }
 0x227   :  { %449 = shalt.err (!%p446_p9)
}
 0x228   :  { %324 = dma.vmem_to_hbm [thread:$0]  %s322_s23, 16, %s553_s5, [#allocation5]  }
 0x229   :  { %454 = dma.done.wait [#allocation5], 16  }
 0x22a   :  { %455 = vsyncadd [#allocation5], 4294967280 }
 0x22b   :  { %328 = vsyncpa [#allocation4], 1 }
 0x22c   :  { %329 = vsyncpa [#allocation7], 1 }
 0x22d   :  { %330 = vsyncpa [#allocation5], 1 }

</bundles_post_ra>
